<compile_context>
chip_gen: v5e
topology: v5e:2x2
jax: 0.10.0
libtpu: 0.0.40
codegen_flags: <defaults>
</compile_context>

<pallas_src>
import functools
from collections import OrderedDict

import jax
import jax.numpy as jnp
from jax.experimental import pallas as pl
from jax.experimental.pallas import tpu as pltpu

TINY_NUMBER = 1e-4

# Whole-array, VMEM-resident spec for weights / biases (loaded once per call,
# not double-buffered per grid step).
_WEIGHT_SPEC = pl.BlockSpec(memory_space=pltpu.MemorySpace.VMEM)


def remap_name(name):
    name = name.replace('.', '-')
    if name[-1] == '/':
        name = name[:-1]
    idx = name.rfind('/')
    for _ in range(2):
        if idx >= 0:
            idx = name[:idx].rfind('/')
    return name[idx + 1:]


def _round_up(x, m):
    return ((x + m - 1) // m) * m


def _choose_tile(n, target):
    """Row tile (multiple of 8) and padded row count divisible by it."""
    if n >= target:
        return _round_up(n, target), target
    n_pad = max(_round_up(n, 8), 8)
    return n_pad, n_pad


def _pad_rows(x, n_pad):
    n = x.shape[0]
    if n == n_pad:
        return x
    return jnp.pad(x, ((0, n_pad - n),) + ((0, 0),) * (x.ndim - 1))


def _sigmoid(x):
    # numerically stable sigmoid via tanh (EUP op): sigmoid(x) = 0.5*(tanh(x/2)+1)
    return 0.5 * (jnp.tanh(0.5 * x) + 1.0)


def _embed(x, freqs):
    parts = [x]
    for f in freqs:  # static Python floats
        parts.append(jnp.sin(x * f))
        parts.append(jnp.cos(x * f))
    return jnp.concatenate(parts, axis=-1)


# ----------------------------------------------------------------------------
# Kernel 1: FarDepth MLP  (dim=6, D=4, W=256)  -> far depth = sigmoid(.)*9 + 1
# ----------------------------------------------------------------------------
def _fardepth_kernel(x_ref, w0, b0, w1, b1, w2, b2, w3, b3, wh, bh, far_ref):
    h = x_ref[...]
    h = jnp.maximum(jnp.dot(h, w0[...], preferred_element_type=jnp.float32) + b0[...], 0.0)
    h = jnp.maximum(jnp.dot(h, w1[...], preferred_element_type=jnp.float32) + b1[...], 0.0)
    h = jnp.maximum(jnp.dot(h, w2[...], preferred_element_type=jnp.float32) + b2[...], 0.0)
    h = jnp.maximum(jnp.dot(h, w3[...], preferred_element_type=jnp.float32) + b3[...], 0.0)
    fd = _sigmoid(jnp.dot(h, wh[...], preferred_element_type=jnp.float32) + bh[...])
    far_ref[...] = fd * 9.0 + 1.0


def run_fardepth(inputd, fd_params, target_tn=512):
    n = inputd.shape[0]
    n_pad, tn = _choose_tile(n, target_tn)
    x = _pad_rows(inputd, n_pad)
    in_specs = [pl.BlockSpec((tn, 6), lambda i: (i, 0))]
    in_specs += [_WEIGHT_SPEC] * len(fd_params)
    out = pl.pallas_call(
        _fardepth_kernel,
        out_shape=jax.ShapeDtypeStruct((n_pad, 1), jnp.float32),
        grid=(n_pad // tn,),
        in_specs=in_specs,
        out_specs=pl.BlockSpec((tn, 1), lambda i: (i, 0)),
        compiler_params=pltpu.CompilerParams(dimension_semantics=("parallel",)),
    )(x, *fd_params)
    return out[:n]


# ----------------------------------------------------------------------------
# Kernel 2: fused NeRF MLP + volume rendering
#   grid over ray tiles; in-kernel fori_loop over the S samples with online
#   (exact, sequential) transmittance accumulation.
# ----------------------------------------------------------------------------
def _fused_kernel(ray_o_ref, ray_d_ref, vdir_ref, z_ref, dists_ref,
                  wb0, bb0, wb1, bb1, wb2, bb2, wb3, bb3,
                  wsig, bsig, wrm, brm, wr0a, wr0b, br0, wr1, br1,
                  rgbmap_ref, depth_ref, weights_ref, alpha_ref,
                  *, pos_freqs, view_freqs):
    tn, s = z_ref.shape
    z = z_ref[...]          # [TN, S]
    dists = dists_ref[...]  # [TN, S]   (ray_d_norm folded in, last col = far)
    ray_o = ray_o_ref[...]  # [TN, 3]
    ray_d = ray_d_ref[...]  # [TN, 3]

    # View-direction embedding and its rgb-head matmul contribution are
    # sample-invariant: compute once per ray tile, reuse across the loop.
    emb_view = _embed(vdir_ref[...], view_freqs)                                  # [TN, Cv]
    view_ctr = jnp.dot(emb_view, wr0b[...], preferred_element_type=jnp.float32)   # [TN, W/2]

    lane_ids = jax.lax.broadcasted_iota(jnp.int32, (1, s), 1)                     # [1, S]

    # Output accumulators live in the VMEM-resident output blocks.
    weights_ref[...] = jnp.zeros_like(weights_ref)
    alpha_ref[...] = jnp.zeros_like(alpha_ref)

    def body(j, carry):
        t_acc, rgb_acc, d_acc = carry                       # [TN,1],[TN,3],[TN,1]
        sel = (lane_ids == j).astype(jnp.float32)           # [1, S] one-hot lane mask

        z_j = jnp.sum(z * sel, axis=-1, keepdims=True)      # [TN, 1]
        dist_j = jnp.sum(dists * sel, axis=-1, keepdims=True)

        pts = ray_o + z_j * ray_d                           # [TN, 3]
        emb_pos = _embed(pts, pos_freqs)                    # [TN, Cp]

        h = jnp.maximum(jnp.dot(emb_pos, wb0[...], preferred_element_type=jnp.float32) + bb0[...], 0.0)
        h = jnp.maximum(jnp.dot(h, wb1[...], preferred_element_type=jnp.float32) + bb1[...], 0.0)
        h = jnp.maximum(jnp.dot(h, wb2[...], preferred_element_type=jnp.float32) + bb2[...], 0.0)
        h = jnp.maximum(jnp.dot(h, wb3[...], preferred_element_type=jnp.float32) + bb3[...], 0.0)

        sigma = jnp.abs(jnp.dot(h, wsig[...], preferred_element_type=jnp.float32) + bsig[...])  # [TN,1]
        base_remap = jnp.dot(h, wrm[...], preferred_element_type=jnp.float32) + brm[...]        # [TN,256]
        rgb_h = jnp.maximum(
            jnp.dot(base_remap, wr0a[...], preferred_element_type=jnp.float32)
            + view_ctr + br0[...], 0.0)
        rgb = _sigmoid(jnp.dot(rgb_h, wr1[...], preferred_element_type=jnp.float32) + br1[...])  # [TN,3]

        a_j = 1.0 - jnp.exp(-sigma * dist_j)                # [TN, 1]
        w_j = a_j * t_acc                                   # [TN, 1]

        # scatter this sample's column into the [TN, S] output blocks
        alpha_ref[...] = alpha_ref[...] + a_j * sel
        weights_ref[...] = weights_ref[...] + w_j * sel

        rgb_acc = rgb_acc + w_j * rgb
        d_acc = d_acc + w_j * z_j
        t_acc = t_acc * (1.0 - a_j + TINY_NUMBER)           # exclusive cumprod, exact order
        return (t_acc, rgb_acc, d_acc)

    init = (jnp.ones((tn, 1), jnp.float32),
            jnp.zeros((tn, 3), jnp.float32),
            jnp.zeros((tn, 1), jnp.float32))
    _, rgb_acc, d_acc = jax.lax.fori_loop(0, s, body, init)

    rgbmap_ref[...] = rgb_acc
    depth_ref[...] = d_acc


def run_fused(ray_o, ray_d, viewdirs, z_vals, far, dnorm, mlp_params,
              pos_freqs, view_freqs, target_tn=256):
    n, s = z_vals.shape
    n_pad, tn = _choose_tile(n, target_tn)

    # dists: cat(z[1:]-z[:-1], far) * ||ray_d||  (same as the reference module)
    dists = dnorm * jnp.concatenate([z_vals[:, 1:] - z_vals[:, :-1], far], axis=-1)

    ray_o_p = _pad_rows(ray_o, n_pad)
    ray_d_p = _pad_rows(ray_d, n_pad)
    vdir_p = _pad_rows(viewdirs, n_pad)
    z_p = _pad_rows(z_vals, n_pad)
    dists_p = _pad_rows(dists, n_pad)

    kern = functools.partial(_fused_kernel,
                             pos_freqs=tuple(pos_freqs),
                             view_freqs=tuple(view_freqs))

    row3 = pl.BlockSpec((tn, 3), lambda i: (i, 0))
    rows = pl.BlockSpec((tn, s), lambda i: (i, 0))
    in_specs = [row3, row3, row3, rows, rows] + [_WEIGHT_SPEC] * len(mlp_params)
    out_shape = (jax.ShapeDtypeStruct((n_pad, 3), jnp.float32),
                 jax.ShapeDtypeStruct((n_pad, 1), jnp.float32),
                 jax.ShapeDtypeStruct((n_pad, s), jnp.float32),
                 jax.ShapeDtypeStruct((n_pad, s), jnp.float32))
    out_specs = (pl.BlockSpec((tn, 3), lambda i: (i, 0)),
                 pl.BlockSpec((tn, 1), lambda i: (i, 0)),
                 pl.BlockSpec((tn, s), lambda i: (i, 0)),
                 pl.BlockSpec((tn, s), lambda i: (i, 0)))

    rgb_map, depth, weights, alpha = pl.pallas_call(
        kern,
        out_shape=out_shape,
        grid=(n_pad // tn,),
        in_specs=in_specs,
        out_specs=out_specs,
        compiler_params=pltpu.CompilerParams(dimension_semantics=("parallel",)),
    )(ray_o_p, ray_d_p, vdir_p, z_p, dists_p, *mlp_params)

    return rgb_map[:n], depth[:n, 0], weights[:n], alpha[:n]


# ----------------------------------------------------------------------------
# Glue (plain JAX)
# ----------------------------------------------------------------------------
def perturb_samples_modle(z_vals, key):
    mids = 0.5 * (z_vals[..., 1:] + z_vals[..., :-1])
    upper = jnp.concatenate([mids, z_vals[..., -1:]], axis=-1)
    lower = jnp.concatenate([z_vals[..., 0:1], mids], axis=-1)
    t_rand = jax.random.uniform(key, z_vals.shape, z_vals.dtype)
    return lower + (upper - lower) * t_rand


def nerf_net_forward(params, ray_o, ray_d, fg_near_depth, fg_far_depth0, fg_z_vals,
                     idx, is_train, perturb_key=None):
    ray_d_norm = jnp.linalg.norm(ray_d, axis=-1, keepdims=True)          # [N, 1]
    viewdirs = ray_d / (ray_d_norm + TINY_NUMBER)

    inputd = jnp.concatenate([ray_o, ray_d], axis=1)                      # [N, 6]
    far = run_fardepth(inputd, params['fd'])                              # [N, 1] = sigmoid(.)*9+1
    fg_far_depth = far[:, 0]                                              # [N]

    if idx == 0:
        z_vals = fg_near_depth[:, None] * (1.0 - fg_z_vals) + far * fg_z_vals
        if is_train:
            z_vals = perturb_samples_modle(z_vals, perturb_key)
    else:
        z_vals = fg_z_vals

    rgb_map, depth_map, fg_weights, fg_alpha = run_fused(
        ray_o, ray_d, viewdirs, z_vals, far, ray_d_norm,
        params['mlp'], params['pos_freqs'], params['view_freqs'])

    ret = OrderedDict([
        ('rgb', rgb_map), ('depth', depth_map),
        ('fg_weights', fg_weights), ('fg_rgb', rgb_map), ('fg_depth', depth_map),
        ('alpha', fg_alpha), ('fg_z_vals', z_vals),
        ('fg_far_depth', fg_far_depth), ('fg_far_depth2', fg_far_depth),
    ])
    return ret


def nerf_net_with_autoexpo_forward(params, ray_o, ray_d, fg_near_depth, fg_z_max,
                                   fg_z_vals, idx, is_train, img_name=None,
                                   perturb_key=None):
    ret = nerf_net_forward(params, ray_o, ray_d, fg_near_depth, fg_z_max, fg_z_vals,
                           idx, is_train, perturb_key)
    if img_name is not None:
        img_name = remap_name(img_name)
    autoexpo_params = params.get('autoexpo', None)
    if autoexpo_params is not None and img_name in autoexpo_params:
        ae = autoexpo_params[img_name]
        scale = jnp.abs(ae[0]) + 0.5
        shift = ae[1]
        ret['autoexpo'] = (scale, shift)
    return ret


# ----------------------------------------------------------------------------
# Parameter init (deterministic, PyTorch-Linear-like uniform)
# ----------------------------------------------------------------------------
def init_params(key, cfg, img_names=None, optim_autoexpo=True):
    l_pos = cfg['max_freq_log2']
    l_view = cfg['max_freq_log2_viewdirs']
    depth, width = cfg['netdepth'], cfg['netwidth']
    assert depth == 4, "kernel is specialized for netdepth=4"
    in_pos = 3 * (1 + 2 * l_pos)
    in_view = 3 * (1 + 2 * l_view)

    keys = list(jax.random.split(key, 32))
    ki = iter(keys)

    def lin(fan_in, fan_out):
        kw, kb = jax.random.split(next(ki))
        bound = float(fan_in) ** -0.5
        w = jax.random.uniform(kw, (fan_in, fan_out), jnp.float32, -bound, bound)
        b = jax.random.uniform(kb, (1, fan_out), jnp.float32, -bound, bound)
        return w, b

    # FarDepth(dim=6, D=4, W=256) + head(256 -> 1)
    fd, dim = [], 6
    for _ in range(4):
        w, b = lin(dim, 256)
        fd += [w, b]
        dim = 256
    w, b = lin(dim, 1)
    fd += [w, b]

    # NeRF MLP (NeRF++ MLPNet with use_viewdirs=True, skips inactive for D=4)
    mlp, dim = [], in_pos
    for _ in range(depth):
        w, b = lin(dim, width)
        mlp += [w, b]
        dim = width
    wsig, bsig = lin(dim, 1)
    wrm, brm = lin(dim, 256)
    wr0, br0 = lin(256 + in_view, width // 2)
    wr1, br1 = lin(width // 2, 3)
    mlp += [wsig, bsig, wrm, brm, wr0[:256], wr0[256:], br0, wr1, br1]

    params = dict(
        fd=tuple(fd), mlp=tuple(mlp),
        pos_freqs=tuple(2.0 ** i for i in range(l_pos)),
        view_freqs=tuple(2.0 ** i for i in range(l_view)),
    )
    if optim_autoexpo and img_names:
        params['autoexpo'] = {remap_name(x): jnp.array([0.5, 0.0], jnp.float32)
                              for x in img_names}
    return params


if __name__ == "__main__":
    key = jax.random.PRNGKey(0)
    N, S = 16, 16  # 16 rays x 16 samples
    cfg = dict(max_freq_log2=4, max_freq_log2_viewdirs=4, netdepth=4, netwidth=32)

    pkey, dkey = jax.random.split(key)
    params = init_params(pkey, cfg, img_names=['data/img0.png'], optim_autoexpo=True)

    k1, k2, k3, k4 = jax.random.split(dkey, 4)
    ray_o = jax.random.normal(k1, (N, 3), jnp.float32)
    ray_d = jax.random.normal(k2, (N, 3), jnp.float32)
    fg_near_depth = jax.random.uniform(k3, (N,), jnp.float32, 0.1, 1.0)
    fg_z_max = jnp.ones((N,), jnp.float32)  # unused by the net (far depth is re-predicted)
    fg_z_vals = jnp.broadcast_to(jnp.linspace(0.0, 1.0, S), (N, S)).astype(jnp.float32)

    ret = nerf_net_with_autoexpo_forward(
        params, ray_o, ray_d, fg_near_depth, fg_z_max, fg_z_vals,
        idx=0, is_train=False, img_name='data/img0.png', perturb_key=k4)
    jax.block_until_ready(ret)

    assert ret['rgb'].shape == (N, 3)
    assert ret['depth'].shape == (N,)
    assert ret['fg_weights'].shape == (N, S)
    assert ret['alpha'].shape == (N, S)
    assert ret['fg_z_vals'].shape == (N, S)
    assert ret['fg_far_depth'].shape == (N,)
    assert bool(jnp.all(jnp.isfinite(ret['rgb'])))
    assert bool(jnp.all(jnp.isfinite(ret['fg_weights'])))
    assert 'autoexpo' in ret
    print("KERNEL_OK")
</pallas_src>

<mosaic_0001>
module attributes {stable_mosaic.version = 11 : i64} {
  func.func @_fardepth_kernel(%arg0: i32, %arg1: memref<16x6xf32, #tpu.memory_space<vmem>>, %arg2: memref<6x256xf32, #tpu.memory_space<vmem>>, %arg3: memref<1x256xf32, #tpu.memory_space<vmem>>, %arg4: memref<256x256xf32, #tpu.memory_space<vmem>>, %arg5: memref<1x256xf32, #tpu.memory_space<vmem>>, %arg6: memref<256x256xf32, #tpu.memory_space<vmem>>, %arg7: memref<1x256xf32, #tpu.memory_space<vmem>>, %arg8: memref<256x256xf32, #tpu.memory_space<vmem>>, %arg9: memref<1x256xf32, #tpu.memory_space<vmem>>, %arg10: memref<256x1xf32, #tpu.memory_space<vmem>>, %arg11: memref<1x1xf32, #tpu.memory_space<vmem>>, %arg12: memref<16x1xf32, #tpu.memory_space<vmem>>) attributes {dimension_semantics = [#tpu.dimension_semantics<parallel>], iteration_bounds = array<i64: 1>, scalar_prefetch = 0 : i64, scratch_operands = 0 : i64, tpu.core_type = #tpu.core_type<tc>, window_params = [{transform_indices = @transform_0, window_bounds = array<i64: 16, 6>}, {pipeline_mode = #tpu.pipeline_mode<synchronous>, transform_indices = @transform_1, window_bounds = array<i64: 6, 256>}, {pipeline_mode = #tpu.pipeline_mode<synchronous>, transform_indices = @transform_2, window_bounds = array<i64: 1, 256>}, {pipeline_mode = #tpu.pipeline_mode<synchronous>, transform_indices = @transform_3, window_bounds = array<i64: 256, 256>}, {pipeline_mode = #tpu.pipeline_mode<synchronous>, transform_indices = @transform_4, window_bounds = array<i64: 1, 256>}, {pipeline_mode = #tpu.pipeline_mode<synchronous>, transform_indices = @transform_5, window_bounds = array<i64: 256, 256>}, {pipeline_mode = #tpu.pipeline_mode<synchronous>, transform_indices = @transform_6, window_bounds = array<i64: 1, 256>}, {pipeline_mode = #tpu.pipeline_mode<synchronous>, transform_indices = @transform_7, window_bounds = array<i64: 256, 256>}, {pipeline_mode = #tpu.pipeline_mode<synchronous>, transform_indices = @transform_8, window_bounds = array<i64: 1, 256>}, {pipeline_mode = #tpu.pipeline_mode<synchronous>, transform_indices = @transform_9, window_bounds = array<i64: 256, 1>}, {pipeline_mode = #tpu.pipeline_mode<synchronous>, transform_indices = @transform_10, window_bounds = array<i64: 1, 1>}, {transform_indices = @transform_11, window_bounds = array<i64: 16, 1>}]} {
    %c0 = arith.constant 0 : index
    %c0_0 = arith.constant 0 : index
    %0 = vector.load %arg1[%c0, %c0_0] : memref<16x6xf32, #tpu.memory_space<vmem>>, vector<16x6xf32>
    %c0_1 = arith.constant 0 : index
    %c0_2 = arith.constant 0 : index
    %1 = vector.load %arg2[%c0_1, %c0_2] : memref<6x256xf32, #tpu.memory_space<vmem>>, vector<6x256xf32>
    %cst = arith.constant dense<0.000000e+00> : vector<16x256xf32>
    %2 = tpu.matmul %0, %1, %cst {dimension_numbers = #tpu.dot_dimension_numbers<[1], [0], [0], [1], [0, 0, 1, 1], [], []>} : vector<16x6xf32>, vector<6x256xf32>, vector<16x256xf32> -> vector<16x256xf32>
    %c0_3 = arith.constant 0 : index
    %c0_4 = arith.constant 0 : index
    %3 = vector.load %arg3[%c0_3, %c0_4] : memref<1x256xf32, #tpu.memory_space<vmem>>, vector<1x256xf32>
    %4 = vector.broadcast %3 : vector<1x256xf32> to vector<16x256xf32>
    %5 = arith.addf %2, %4 : vector<16x256xf32>
    %cst_5 = arith.constant 0.000000e+00 : f32
    %6 = vector.broadcast %cst_5 : f32 to vector<16x256xf32>
    %7 = arith.maximumf %5, %6 : vector<16x256xf32>
    %c0_6 = arith.constant 0 : index
    %c0_7 = arith.constant 0 : index
    %8 = vector.load %arg4[%c0_6, %c0_7] : memref<256x256xf32, #tpu.memory_space<vmem>>, vector<256x256xf32>
    %cst_8 = arith.constant dense<0.000000e+00> : vector<16x256xf32>
    %9 = tpu.matmul %7, %8, %cst_8 {dimension_numbers = #tpu.dot_dimension_numbers<[1], [0], [0], [1], [0, 0, 1, 1], [], []>} : vector<16x256xf32>, vector<256x256xf32>, vector<16x256xf32> -> vector<16x256xf32>
    %c0_9 = arith.constant 0 : index
    %c0_10 = arith.constant 0 : index
    %10 = vector.load %arg5[%c0_9, %c0_10] : memref<1x256xf32, #tpu.memory_space<vmem>>, vector<1x256xf32>
    %11 = vector.broadcast %10 : vector<1x256xf32> to vector<16x256xf32>
    %12 = arith.addf %9, %11 : vector<16x256xf32>
    %cst_11 = arith.constant 0.000000e+00 : f32
    %13 = vector.broadcast %cst_11 : f32 to vector<16x256xf32>
    %14 = arith.maximumf %12, %13 : vector<16x256xf32>
    %c0_12 = arith.constant 0 : index
    %c0_13 = arith.constant 0 : index
    %15 = vector.load %arg6[%c0_12, %c0_13] : memref<256x256xf32, #tpu.memory_space<vmem>>, vector<256x256xf32>
    %cst_14 = arith.constant dense<0.000000e+00> : vector<16x256xf32>
    %16 = tpu.matmul %14, %15, %cst_14 {dimension_numbers = #tpu.dot_dimension_numbers<[1], [0], [0], [1], [0, 0, 1, 1], [], []>} : vector<16x256xf32>, vector<256x256xf32>, vector<16x256xf32> -> vector<16x256xf32>
    %c0_15 = arith.constant 0 : index
    %c0_16 = arith.constant 0 : index
    %17 = vector.load %arg7[%c0_15, %c0_16] : memref<1x256xf32, #tpu.memory_space<vmem>>, vector<1x256xf32>
    %18 = vector.broadcast %17 : vector<1x256xf32> to vector<16x256xf32>
    %19 = arith.addf %16, %18 : vector<16x256xf32>
    %cst_17 = arith.constant 0.000000e+00 : f32
    %20 = vector.broadcast %cst_17 : f32 to vector<16x256xf32>
    %21 = arith.maximumf %19, %20 : vector<16x256xf32>
    %c0_18 = arith.constant 0 : index
    %c0_19 = arith.constant 0 : index
    %22 = vector.load %arg8[%c0_18, %c0_19] : memref<256x256xf32, #tpu.memory_space<vmem>>, vector<256x256xf32>
    %cst_20 = arith.constant dense<0.000000e+00> : vector<16x256xf32>
    %23 = tpu.matmul %21, %22, %cst_20 {dimension_numbers = #tpu.dot_dimension_numbers<[1], [0], [0], [1], [0, 0, 1, 1], [], []>} : vector<16x256xf32>, vector<256x256xf32>, vector<16x256xf32> -> vector<16x256xf32>
    %c0_21 = arith.constant 0 : index
    %c0_22 = arith.constant 0 : index
    %24 = vector.load %arg9[%c0_21, %c0_22] : memref<1x256xf32, #tpu.memory_space<vmem>>, vector<1x256xf32>
    %25 = vector.broadcast %24 : vector<1x256xf32> to vector<16x256xf32>
    %26 = arith.addf %23, %25 : vector<16x256xf32>
    %cst_23 = arith.constant 0.000000e+00 : f32
    %27 = vector.broadcast %cst_23 : f32 to vector<16x256xf32>
    %28 = arith.maximumf %26, %27 : vector<16x256xf32>
    %c0_24 = arith.constant 0 : index
    %c0_25 = arith.constant 0 : index
    %29 = vector.load %arg10[%c0_24, %c0_25] : memref<256x1xf32, #tpu.memory_space<vmem>>, vector<256x1xf32>
    %cst_26 = arith.constant dense<0.000000e+00> : vector<16x1xf32>
    %30 = tpu.matmul %28, %29, %cst_26 {dimension_numbers = #tpu.dot_dimension_numbers<[1], [0], [0], [1], [0, 0, 1, 1], [], []>} : vector<16x256xf32>, vector<256x1xf32>, vector<16x1xf32> -> vector<16x1xf32>
    %c0_27 = arith.constant 0 : index
    %c0_28 = arith.constant 0 : index
    %31 = vector.load %arg11[%c0_27, %c0_28] : memref<1x1xf32, #tpu.memory_space<vmem>>, vector<1x1xf32>
    %32 = vector.broadcast %31 : vector<1x1xf32> to vector<16x1xf32>
    %33 = arith.addf %30, %32 : vector<16x1xf32>
    %cst_29 = arith.constant 5.000000e-01 : f32
    %34 = vector.broadcast %cst_29 : f32 to vector<16x1xf32>
    %35 = arith.mulf %34, %33 : vector<16x1xf32>
    %36 = math.tanh %35 : vector<16x1xf32>
    %cst_30 = arith.constant 1.000000e+00 : f32
    %37 = vector.broadcast %cst_30 : f32 to vector<16x1xf32>
    %38 = arith.addf %36, %37 : vector<16x1xf32>
    %cst_31 = arith.constant 5.000000e-01 : f32
    %39 = vector.broadcast %cst_31 : f32 to vector<16x1xf32>
    %40 = arith.mulf %39, %38 : vector<16x1xf32>
    %cst_32 = arith.constant 9.000000e+00 : f32
    %41 = vector.broadcast %cst_32 : f32 to vector<16x1xf32>
    %42 = arith.mulf %40, %41 : vector<16x1xf32>
    %cst_33 = arith.constant 1.000000e+00 : f32
    %43 = vector.broadcast %cst_33 : f32 to vector<16x1xf32>
    %44 = arith.addf %42, %43 : vector<16x1xf32>
    %c0_34 = arith.constant 0 : index
    %c0_35 = arith.constant 0 : index
    %45 = vector.load %arg12[%c0_34, %c0_35] : memref<16x1xf32, #tpu.memory_space<vmem>>, vector<16x1xf32>
    tpu.vector_store %arg12[%c0_34, %c0_35], %44 {strides = array<i32>} : memref<16x1xf32, #tpu.memory_space<vmem>>, vector<16x1xf32>,
    return
  }
  func.func @transform_0(%arg0: i32) -> (i32, i32) {
    %c0_i32 = arith.constant 0 : i32
    %c0_i32_0 = arith.constant 0 : i32
    return %arg0, %c0_i32 : i32, i32
  }
  func.func @transform_1(%arg0: i32) -> (i32, i32) {
    %c0_i32 = arith.constant 0 : i32
    %c0_i32_0 = arith.constant 0 : i32
    %c0_i32_1 = arith.constant 0 : i32
    return %c0_i32, %c0_i32_0 : i32, i32
  }
  func.func @transform_2(%arg0: i32) -> (i32, i32) {
    %c0_i32 = arith.constant 0 : i32
    %c0_i32_0 = arith.constant 0 : i32
    %c0_i32_1 = arith.constant 0 : i32
    return %c0_i32, %c0_i32_0 : i32, i32
  }
  func.func @transform_3(%arg0: i32) -> (i32, i32) {
    %c0_i32 = arith.constant 0 : i32
    %c0_i32_0 = arith.constant 0 : i32
    %c0_i32_1 = arith.constant 0 : i32
    return %c0_i32, %c0_i32_0 : i32, i32
  }
  func.func @transform_4(%arg0: i32) -> (i32, i32) {
    %c0_i32 = arith.constant 0 : i32
    %c0_i32_0 = arith.constant 0 : i32
    %c0_i32_1 = arith.constant 0 : i32
    return %c0_i32, %c0_i32_0 : i32, i32
  }
  func.func @transform_5(%arg0: i32) -> (i32, i32) {
    %c0_i32 = arith.constant 0 : i32
    %c0_i32_0 = arith.constant 0 : i32
    %c0_i32_1 = arith.constant 0 : i32
    return %c0_i32, %c0_i32_0 : i32, i32
  }
  func.func @transform_6(%arg0: i32) -> (i32, i32) {
    %c0_i32 = arith.constant 0 : i32
    %c0_i32_0 = arith.constant 0 : i32
    %c0_i32_1 = arith.constant 0 : i32
    return %c0_i32, %c0_i32_0 : i32, i32
  }
  func.func @transform_7(%arg0: i32) -> (i32, i32) {
    %c0_i32 = arith.constant 0 : i32
    %c0_i32_0 = arith.constant 0 : i32
    %c0_i32_1 = arith.constant 0 : i32
    return %c0_i32, %c0_i32_0 : i32, i32
  }
  func.func @transform_8(%arg0: i32) -> (i32, i32) {
    %c0_i32 = arith.constant 0 : i32
    %c0_i32_0 = arith.constant 0 : i32
    %c0_i32_1 = arith.constant 0 : i32
    return %c0_i32, %c0_i32_0 : i32, i32
  }
  func.func @transform_9(%arg0: i32) -> (i32, i32) {
    %c0_i32 = arith.constant 0 : i32
    %c0_i32_0 = arith.constant 0 : i32
    %c0_i32_1 = arith.constant 0 : i32
    return %c0_i32, %c0_i32_0 : i32, i32
  }
  func.func @transform_10(%arg0: i32) -> (i32, i32) {
    %c0_i32 = arith.constant 0 : i32
    %c0_i32_0 = arith.constant 0 : i32
    %c0_i32_1 = arith.constant 0 : i32
    return %c0_i32, %c0_i32_0 : i32, i32
  }
  func.func @transform_11(%arg0: i32) -> (i32, i32) {
    %c0_i32 = arith.constant 0 : i32
    %c0_i32_0 = arith.constant 0 : i32
    return %arg0, %c0_i32 : i32, i32
  }
}

</mosaic_0001>

<bundles_post_ra>
// kernel: tpu_custom_call.1
= control target key start
LH: loop header
LB: loop body
LE: loop exit
PB: predicated region body
PF: predicated region fallthrough
CT: control target
= control target key end

     0   :  { %s1097_s0 = inlined_call_operand.vmem [shape: f32[16,6], index: 0, kind: input, shape index: {}]   ;;  %s1098_s1 = inlined_call_operand.vmem [shape: f32[6,256], index: 1, kind: input, shape index: {}]   ;;  %s1099_s2 = inlined_call_operand.vmem [shape: f32[1,256], index: 2, kind: input, shape index: {}]   ;;  %s1100_s3 = inlined_call_operand.hbm [shape: f32[256,256], index: 3, kind: input, shape index: {}]   ;;  %s1101_s4 = inlined_call_operand.vmem [shape: f32[1,256], index: 4, kind: input, shape index: {}]   ;;  %s1102_s5 = inlined_call_operand.hbm [shape: f32[256,256], index: 5, kind: input, shape index: {}]   ;;  %s1103_s6 = inlined_call_operand.vmem [shape: f32[1,256], index: 6, kind: input, shape index: {}]   ;;  %s1104_s7 = inlined_call_operand.hbm [shape: f32[256,256], index: 7, kind: input, shape index: {}]   ;;  %s1105_s8 = inlined_call_operand.vmem [shape: f32[1,256], index: 8, kind: input, shape index: {}]   ;;  %s1106_s9 = inlined_call_operand.vmem [shape: f32[256,1], index: 9, kind: input, shape index: {}]   ;;  %s1107_s10 = inlined_call_operand.<no memory space> [shape: f32[1,1], index: 10, kind: input, shape index: {}]   ;;  %s1108_s11 = inlined_call_operand.vmem [shape: f32[16,1], index: 11, kind: output, shape index: {}]  }
   0x1   :  { %v16_v0 = vstv %s1107_s10 }
   0x2   :  { %17 = vst [vmem:[#allocation2] sm:$0x1] %v16_v0 }
   0x3   :  { %18 = vsyncpa [#allocation4], 0 }
   0x4   :  { %19 = vsyncpa [#allocation6], 0  ;;  %s45_s21 = sshll.u32 %s1102_s5, 4  ;;  %s886_s22 = smov [#allocation5]   ;;  %s46_s21 = int_to_ptr.hbm [resolvable:$true] %s45_s21 }
   0x5   :  { %s47_s23 = sshll.u32 %s886_s22, 4  ;;  %s30_s26 = sshll.u32 %s1100_s3, 4  ;;  %s48_s23 = int_to_ptr.vmem [resolvable:$true] %s47_s23  ;;  %s31_s26 = int_to_ptr.hbm [resolvable:$true] %s30_s26 }
   0x6   :  { %s887_s27 = smov 256   ;;  %s888_s28 = smov 16  }
   0x7   :  { %53 = dma.hbm_to_vmem [thread:$0]  %s46_s21, 8192, %s48_s23, [#allocation6], %s887_s27, %s887_s27, %s888_s28  }
   0x8   :  { %s889_s10 = smov [#allocation3]   ;;  %s60_s13 = sshll.u32 %s1104_s7, 4  ;;  %s61_s13 = int_to_ptr.hbm [resolvable:$true] %s60_s13 }
   0x9   :  { %s32_s29 = sshll.u32 %s889_s10, 4  ;;  %s890_s5 = smov [#allocation7]   ;;  %s33_s29 = int_to_ptr.vmem [resolvable:$true] %s32_s29 }
   0xa   :  { %38 = dma.hbm_to_vmem [thread:$0]  %s31_s26, 8192, %s33_s29, [#allocation4], %s887_s27, %s887_s27, %s888_s28  }
   0xb   :  { %s62_s14 = sshll.u32 %s890_s5, 4  ;;  %s63_s14 = int_to_ptr.vmem [resolvable:$true] %s62_s14 }
   0xc   :  { %68 = dma.hbm_to_vmem [thread:$0]  %s61_s13, 8192, %s63_s14, [#allocation6], %s887_s27, %s887_s27, %s888_s28  }
   0xd   :  { %882 = dma.done.wait [#allocation4], 8192  }
   0xe   :  { %883 = vsyncadd [#allocation4], 4294959104 }
   0xf   :  { %884 = dma.done.wait [#allocation6], 16384  }
  0x10   :  { %885 = vsyncadd [#allocation6], 4294950912  ;;  %vm104_vm0 = vcmask 1045504   ;;  %vm97_vm1 = vcmask 48128   ;;  %v89_v1 = vld [vmem:[%s1098_s1] sm:$0x3f] }
  0x11   :  { %v87_v2 = vld [vmem:[%s1097_s0] sm:$0xff]  ;;  %v90_v3 = vld [vmem:[%s1098_s1 + $0x8] sm:$0x3f]  ;;  %762 = vmatpush.msk.msra.mxu0 %vm104_vm0, %v89_v1  ;;  %v191_v4 = vld [vmem:[#allocation3 + $0xf0] sm:$0xff]  ;;  %vm753_vm2 = vcmask 7168  }
  0x12   :  { %765 = vmatpush.msk.msra.mxu1 %vm104_vm0, %v90_v3  ;;  %v192_v5 = vld [vmem:[#allocation3 + $0xf8] sm:$0xff]  ;;  %763 = vmatmul.msk.f32.vlgmr.msra.gmra.mxu0 %vm97_vm1, %v87_v2  ;;  %v189_v6 = vld [vmem:[#allocation3 + $0xe0] sm:$0xff]  ;;  %v223_v7 = vld [vmem:[#allocation3 + $0x1f0] sm:$0xff] }
  0x13   :  { %766 = vmatmul.msk.f32.vlgmr.msra.gmra.mxu1 %vm97_vm1, %v87_v2  ;;  %v190_v8 = vld [vmem:[#allocation3 + $0xe8] sm:$0xff]  ;;  %231 = vmatpush.msra.mxu2 %v191_v4  ;;  %v224_v9 = vld [vmem:[#allocation3 + $0x1f8] sm:$0xff]  ;;  %v221_v10 = vld [vmem:[#allocation3 + $0x1e0] sm:$0xff] }
  0x14   :  { %277 = vmatpush.msrb.mxu0 %v192_v5  ;;  %254 = vmatpush.msra.mxu3 %v223_v7  ;;  %v187_v11 = vld [vmem:[#allocation3 + $0xd0] sm:$0xff]  ;;  %v188_v12 = vld [vmem:[#allocation3 + $0xd8] sm:$0xff]  ;;  %v222_v13 = vld [vmem:[#allocation3 + $0x1e8] sm:$0xff] }
  0x15   :  { %300 = vmatpush.msrb.mxu1 %v224_v9  ;;  %232 = vmatpush.msra.mxu2 %v189_v6  ;;  %v219_v14 = vld [vmem:[#allocation3 + $0x1d0] sm:$0xff]  ;;  %v220_v15 = vld [vmem:[#allocation3 + $0x1d8] sm:$0xff]  ;;  %v185_v16 = vld [vmem:[#allocation3 + $0xc0] sm:$0xff] }
  0x16   :  { %278 = vmatpush.msrb.mxu0 %v190_v8  ;;  %255 = vmatpush.msra.mxu3 %v221_v10  ;;  %v186_v17 = vld [vmem:[#allocation3 + $0xc8] sm:$0xff]  ;;  %v183_v19 = vld [vmem:[#allocation3 + $0xb0] sm:$0xff]  ;;  %v217_v20 = vld [vmem:[#allocation3 + $0x1c0] sm:$0xff] }
  0x17   :  { %301 = vmatpush.msrb.mxu1 %v222_v13  ;;  %v88_v18 = vld [vmem:[%s1097_s0 + $0x8] sm:$0xff]  ;;  %233 = vmatpush.msra.mxu2 %v187_v11  ;;  %v184_v21 = vld [vmem:[#allocation3 + $0xb8] sm:$0xff]  ;;  %v215_v24 = vld [vmem:[#allocation3 + $0x1b0] sm:$0xff] }
  0x18   :  { %279 = vmatpush.msrb.mxu0 %v188_v12  ;;  %256 = vmatpush.msra.mxu3 %v219_v14  ;;  %v218_v22 = vld [vmem:[#allocation3 + $0x1c8] sm:$0xff]  ;;  %v181_v23 = vld [vmem:[#allocation3 + $0xa0] sm:$0xff]  ;;  %v216_v26 = vld [vmem:[#allocation3 + $0x1b8] sm:$0xff] }
  0x19   :  { %302 = vmatpush.msrb.mxu1 %v220_v15  ;;  %234 = vmatpush.msra.mxu2 %v185_v16  ;;  %v182_v25 = vld [vmem:[#allocation3 + $0xa8] sm:$0xff]  ;;  %v179_v27 = vld [vmem:[#allocation3 + $0x90] sm:$0xff]  ;;  %v213_v28 = vld [vmem:[#allocation3 + $0x1a0] sm:$0xff] }
  0x1a   :  { %280 = vmatpush.msrb.mxu0 %v186_v17  ;;  %257 = vmatpush.msra.mxu3 %v217_v20  ;;  %v180_v29 = vld [vmem:[#allocation3 + $0x98] sm:$0xff]  ;;  %v214_v30 = vld [vmem:[#allocation3 + $0x1a8] sm:$0xff]  ;;  %v177_v31 = vld [vmem:[#allocation3 + $0x80] sm:$0xff] }
  0x1b   :  { %764 = vmatmul.msk.f32.gmra.mxu0 %vm97_vm1, %v88_v18  ;;  %767 = vmatmul.msk.f32.gmra.mxu1 %vm97_vm1, %v88_v18  ;;  %v211_v32 = vld [vmem:[#allocation3 + $0x190] sm:$0xff]  ;;  %v178_v33 = vld [vmem:[#allocation3 + $0x88] sm:$0xff]  ;;  %v212_v34 = vld [vmem:[#allocation3 + $0x198] sm:$0xff] }
  0x1c   :  { %235 = vmatpush.msra.mxu2 %v183_v19  ;;  %281 = vmatpush.msrb.mxu0 %v184_v21  ;;  %v175_v35 = vld [vmem:[#allocation3 + $0x70] sm:$0xff]  ;;  %v209_v36 = vld [vmem:[#allocation3 + $0x180] sm:$0xff]  ;;  %v176_v37 = vld [vmem:[#allocation3 + $0x78] sm:$0xff] }
  0x1d   :  { %303 = vmatpush.msrb.mxu1 %v218_v22  ;;  %258 = vmatpush.msra.mxu3 %v215_v24  ;;  %v210_v38 = vld [vmem:[#allocation3 + $0x188] sm:$0xff]  ;;  %v173_v39 = vld [vmem:[#allocation3 + $0x60] sm:$0xff]  ;;  %v207_v40 = vld [vmem:[#allocation3 + $0x170] sm:$0xff] }
  0x1e   :  { %236 = vmatpush.msra.mxu2 %v181_v23  ;;  %282 = vmatpush.msrb.mxu0 %v182_v25  ;;  %v174_v41 = vld [vmem:[#allocation3 + $0x68] sm:$0xff]  ;;  %v208_v42 = vld [vmem:[#allocation3 + $0x178] sm:$0xff]  ;;  %v171_v43 = vld [vmem:[#allocation3 + $0x50] sm:$0xff] }
  0x1f   :  { %304 = vmatpush.msrb.mxu1 %v216_v26  ;;  %259 = vmatpush.msra.mxu3 %v213_v28  ;;  %v205_v44 = vld [vmem:[#allocation3 + $0x160] sm:$0xff]  ;;  %v172_v45 = vld [vmem:[#allocation3 + $0x58] sm:$0xff]  ;;  %v206_v46 = vld [vmem:[#allocation3 + $0x168] sm:$0xff] }
  0x20   :  { %237 = vmatpush.msra.mxu2 %v179_v27  ;;  %283 = vmatpush.msrb.mxu0 %v180_v29  ;;  %v169_v47 = vld [vmem:[#allocation3 + $0x40] sm:$0xff]  ;;  %v203_v48 = vld [vmem:[#allocation3 + $0x150] sm:$0xff]  ;;  %v170_v49 = vld [vmem:[#allocation3 + $0x48] sm:$0xff] }
  0x21   :  { %305 = vmatpush.msrb.mxu1 %v214_v30  ;;  %260 = vmatpush.msra.mxu3 %v211_v32  ;;  %v204_v50 = vld [vmem:[#allocation3 + $0x158] sm:$0xff]  ;;  %v167_v51 = vld [vmem:[#allocation3 + $0x30] sm:$0xff]  ;;  %v201_v52 = vld [vmem:[#allocation3 + $0x140] sm:$0xff] }
  0x22   :  { %238 = vmatpush.msra.mxu2 %v177_v31  ;;  %284 = vmatpush.msrb.mxu0 %v178_v33  ;;  %v168_v53 = vld [vmem:[#allocation3 + $0x38] sm:$0xff]  ;;  %v202_v54 = vld [vmem:[#allocation3 + $0x148] sm:$0xff]  ;;  %v165_v55 = vld [vmem:[#allocation3 + $0x20] sm:$0xff] }
  0x23   :  { %306 = vmatpush.msrb.mxu1 %v212_v34  ;;  %261 = vmatpush.msra.mxu3 %v209_v36  ;;  %v199_v56 = vld [vmem:[#allocation3 + $0x130] sm:$0xff]  ;;  %v166_v57 = vld [vmem:[#allocation3 + $0x28] sm:$0xff]  ;;  %v200_v58 = vld [vmem:[#allocation3 + $0x138] sm:$0xff] }
  0x24   :  { %239 = vmatpush.msra.mxu2 %v175_v35  ;;  %285 = vmatpush.msrb.mxu0 %v176_v37  ;;  %v163_v59 = vld [vmem:[#allocation3 + $0x10] sm:$0xff]  ;;  %v197_v60 = vld [vmem:[#allocation3 + $0x120] sm:$0xff]  ;;  %v164_v61 = vld [vmem:[#allocation3 + $0x18] sm:$0xff] }
  0x25   :  { %307 = vmatpush.msrb.mxu1 %v210_v38  ;;  %262 = vmatpush.msra.mxu3 %v207_v40  ;;  %v198_v62 = vld [vmem:[#allocation3 + $0x128] sm:$0xff]  ;;  %v161_v63 = vld [vmem:[#allocation3] sm:$0xff]  ;;  %v195_v0 = vld [vmem:[#allocation3 + $0x110] sm:$0xff] }
  0x26   :  { %240 = vmatpush.msra.mxu2 %v173_v39  ;;  %286 = vmatpush.msrb.mxu0 %v174_v41  ;;  %v162_v1 = vld [vmem:[#allocation3 + $0x8] sm:$0xff]  ;;  %v196_v2 = vld [vmem:[#allocation3 + $0x118] sm:$0xff]  ;;  %v193_v3 = vld [vmem:[#allocation3 + $0x100] sm:$0xff] }
  0x27   :  { %308 = vmatpush.msrb.mxu1 %v208_v42  ;;  %263 = vmatpush.msra.mxu3 %v205_v44  ;;  %v194_v4 = vld [vmem:[#allocation3 + $0x108] sm:$0xff]  ;;  %v389_v5 = vld [vmem:[#allocation5 + $0x1f0] sm:$0xff]  ;;  %v390_v6 = vld [vmem:[#allocation5 + $0x1f8] sm:$0xff] }
  0x28   :  { %241 = vmatpush.msra.mxu2 %v171_v43  ;;  %287 = vmatpush.msrb.mxu0 %v172_v45  ;;  %v387_v7 = vld [vmem:[#allocation5 + $0x1e0] sm:$0xff]  ;;  %v388_v8 = vld [vmem:[#allocation5 + $0x1e8] sm:$0xff]  ;;  %v385_v9 = vld [vmem:[#allocation5 + $0x1d0] sm:$0xff] }
  0x29   :  { %309 = vmatpush.msrb.mxu1 %v206_v46  ;;  %264 = vmatpush.msra.mxu3 %v203_v48  ;;  %v386_v10 = vld [vmem:[#allocation5 + $0x1d8] sm:$0xff]  ;;  %v357_v11 = vld [vmem:[#allocation5 + $0xf0] sm:$0xff]  ;;  %v355_v13 = vld [vmem:[#allocation5 + $0xe0] sm:$0xff] }
  0x2a   :  { %242 = vmatpush.msra.mxu2 %v169_v47  ;;  %288 = vmatpush.msrb.mxu0 %v170_v49  ;;  %v358_v12 = vld [vmem:[#allocation5 + $0xf8] sm:$0xff]  ;;  %v383_v14 = vld [vmem:[#allocation5 + $0x1c0] sm:$0xff]  ;;  %v384_v15 = vld [vmem:[#allocation5 + $0x1c8] sm:$0xff] }
  0x2b   :  { %310 = vmatpush.msrb.mxu1 %v204_v50  ;;  %265 = vmatpush.msra.mxu3 %v201_v52  ;;  %v356_v16 = vld [vmem:[#allocation5 + $0xe8] sm:$0xff]  ;;  %v353_v17 = vld [vmem:[#allocation5 + $0xd0] sm:$0xff]  ;;  %v354_v18 = vld [vmem:[#allocation5 + $0xd8] sm:$0xff] }
  0x2c   :  { %243 = vmatpush.msra.mxu2 %v167_v51  ;;  %289 = vmatpush.msrb.mxu0 %v168_v53  ;;  %v381_v19 = vld [vmem:[#allocation5 + $0x1b0] sm:$0xff]  ;;  %v382_v20 = vld [vmem:[#allocation5 + $0x1b8] sm:$0xff]  ;;  %v351_v21 = vld [vmem:[#allocation5 + $0xc0] sm:$0xff] }
  0x2d   :  { %311 = vmatpush.msrb.mxu1 %v202_v54  ;;  %266 = vmatpush.msra.mxu3 %v199_v56  ;;  %v352_v22 = vld [vmem:[#allocation5 + $0xc8] sm:$0xff]  ;;  %v379_v23 = vld [vmem:[#allocation5 + $0x1a0] sm:$0xff]  ;;  %v349_v25 = vld [vmem:[#allocation5 + $0xb0] sm:$0xff] }
  0x2e   :  { %244 = vmatpush.msra.mxu2 %v165_v55  ;;  %290 = vmatpush.msrb.mxu0 %v166_v57  ;;  %v380_v24 = vld [vmem:[#allocation5 + $0x1a8] sm:$0xff]  ;;  %v350_v26 = vld [vmem:[#allocation5 + $0xb8] sm:$0xff]  ;;  %v377_v27 = vld [vmem:[#allocation5 + $0x190] sm:$0xff] }
  0x2f   :  { %312 = vmatpush.msrb.mxu1 %v200_v58  ;;  %267 = vmatpush.msra.mxu3 %v197_v60  ;;  %v378_v28 = vld [vmem:[#allocation5 + $0x198] sm:$0xff]  ;;  %v347_v29 = vld [vmem:[#allocation5 + $0xa0] sm:$0xff]  ;;  %v348_v30 = vld [vmem:[#allocation5 + $0xa8] sm:$0xff] }
  0x30   :  { %245 = vmatpush.msra.mxu2 %v163_v59  ;;  %291 = vmatpush.msrb.mxu0 %v164_v61  ;;  %v91_v31 = vld [vmem:[%s1099_s2] sm:$0x3]  ;;  %v376_v33 = vld [vmem:[#allocation5 + $0x188] sm:$0xff]  ;;  %v345_v34 = vld [vmem:[#allocation5 + $0x90] sm:$0xff] }
  0x31   :  { %313 = vmatpush.msrb.mxu1 %v198_v62  ;;  %268 = vmatpush.msra.mxu3 %v195_v0  ;;  %v375_v32 = vld [vmem:[#allocation5 + $0x180] sm:$0xff]  ;;  %v346_v35 = vld [vmem:[#allocation5 + $0x98] sm:$0xff]  ;;  %v373_v36 = vld [vmem:[#allocation5 + $0x170] sm:$0xff]  ;;  %v93_v38 = vperm.slane %v91_v31, 0  ;;  %v94_v39 = vperm.slane %v91_v31, 1 }
  0x32   :  { %246 = vmatpush.msra.mxu2 %v161_v63  ;;  %292 = vmatpush.msrb.mxu0 %v162_v1  ;;  %v374_v37 = vld [vmem:[#allocation5 + $0x178] sm:$0xff]  ;;  %v343_v40 = vld [vmem:[#allocation5 + $0x80] sm:$0xff]  ;;  %v344_v41 = vld [vmem:[#allocation5 + $0x88] sm:$0xff] }
  0x33   :  { %314 = vmatpush.msrb.mxu1 %v196_v2  ;;  %269 = vmatpush.msra.mxu3 %v193_v3  ;;  %v371_v42 = vld [vmem:[#allocation5 + $0x160] sm:$0xff]  ;;  %v372_v43 = vld [vmem:[#allocation5 + $0x168] sm:$0xff]  ;;  %v341_v44 = vld [vmem:[#allocation5 + $0x70] sm:$0xff] }
  0x34   :  { %397 = vmatpush.msrb.mxu2 %v357_v11  ;;  %443 = vmatpush.msra.mxu0 %v358_v12  ;;  %v342_v45 = vld [vmem:[#allocation5 + $0x78] sm:$0xff]  ;;  %v369_v48 = vld [vmem:[#allocation5 + $0x150] sm:$0xff]  ;;  %v367_v54 = vld [vmem:[#allocation5 + $0x140] sm:$0xff] }
  0x35   :  { %315 = vmatpush.msrb.mxu1 %v194_v4  ;;  %420 = vmatpush.msrb.mxu3 %v389_v5  ;;  %v370_v49 = vld [vmem:[#allocation5 + $0x158] sm:$0xff]  ;;  %v368_v55 = vld [vmem:[#allocation5 + $0x148] sm:$0xff]  ;;  %v339_v62 = vld [vmem:[#allocation5 + $0x60] sm:$0xff] }
  0x36   :  { %398 = vmatpush.msrb.mxu2 %v355_v13  ;;  %444 = vmatpush.msra.mxu0 %v356_v16  ;;  %v365_v63 = vld [vmem:[#allocation5 + $0x130] sm:$0xff]  ;;  %v340_v0 = vld [vmem:[#allocation5 + $0x68] sm:$0xff]  ;;  %v366_v1 = vld [vmem:[#allocation5 + $0x138] sm:$0xff] }
  0x37   :  { %466 = vmatpush.msra.mxu1 %v390_v6  ;;  %421 = vmatpush.msrb.mxu3 %v387_v7  ;;  %v337_v2 = vld [vmem:[#allocation5 + $0x50] sm:$0xff]  ;;  %v363_v3 = vld [vmem:[#allocation5 + $0x120] sm:$0xff]  ;;  %v338_v4 = vld [vmem:[#allocation5 + $0x58] sm:$0xff] }
  0x38   :  { %399 = vmatpush.msrb.mxu2 %v353_v17  ;;  %445 = vmatpush.msra.mxu0 %v354_v18  ;;  %v364_v5 = vld [vmem:[#allocation5 + $0x128] sm:$0xff]  ;;  %v335_v6 = vld [vmem:[#allocation5 + $0x40] sm:$0xff]  ;;  %v361_v7 = vld [vmem:[#allocation5 + $0x110] sm:$0xff] }
  0x39   :  { %467 = vmatpush.msra.mxu1 %v388_v8  ;;  %422 = vmatpush.msrb.mxu3 %v385_v9  ;;  %v336_v8 = vld [vmem:[#allocation5 + $0x48] sm:$0xff]  ;;  %v362_v9 = vld [vmem:[#allocation5 + $0x118] sm:$0xff]  ;;  %v359_v11 = vld [vmem:[#allocation5 + $0x100] sm:$0xff] }
  0x3a   :  { %400 = vmatpush.msrb.mxu2 %v351_v21  ;;  %446 = vmatpush.msra.mxu0 %v352_v22  ;;  %v334_v12 = vld [vmem:[#allocation5 + $0x38] sm:$0xff]  ;;  %v360_v13 = vld [vmem:[#allocation5 + $0x108] sm:$0xff]  ;;  %v329_v16 = vld [vmem:[#allocation5 + $0x10] sm:$0xff] }
  0x3b   :  { %468 = vmatpush.msra.mxu1 %v386_v10  ;;  %423 = vmatpush.msrb.mxu3 %v383_v14  ;;  %v333_v10 = vld [vmem:[#allocation5 + $0x30] sm:$0xff]  ;;  %v331_v14 = vld [vmem:[#allocation5 + $0x20] sm:$0xff]  ;;  %v330_v17 = vld [vmem:[#allocation5 + $0x18] sm:$0xff] }
  0x3c   :  { %401 = vmatpush.msrb.mxu2 %v349_v25  ;;  %447 = vmatpush.msra.mxu0 %v350_v26  ;;  %v327_v18 = vld [vmem:[#allocation5] sm:$0xff]  ;;  %v556_v21 = vld [vmem:[#allocation7 + $0x1f8] sm:$0xff]  ;;  %v523_v26 = vld [vmem:[#allocation7 + $0xf0] sm:$0xff] }
  0x3d   :  { %469 = vmatpush.msra.mxu1 %v384_v15  ;;  %424 = vmatpush.msrb.mxu3 %v381_v19  ;;  %v332_v15 = vld [vmem:[#allocation5 + $0x28] sm:$0xff]  ;;  %v553_v22 = vld [vmem:[#allocation7 + $0x1e0] sm:$0xff]  ;;  %v552_v25 = vld [vmem:[#allocation7 + $0x1d8] sm:$0xff] }
  0x3e   :  { %402 = vmatpush.msrb.mxu2 %v347_v29  ;;  %448 = vmatpush.msra.mxu0 %v348_v30  ;;  %v328_v19 = vld [vmem:[#allocation5 + $0x8] sm:$0xff]  ;;  %v549_v29 = vld [vmem:[#allocation7 + $0x1c0] sm:$0xff] }
  0x3f   :  { %470 = vmatpush.msra.mxu1 %v382_v20  ;;  %425 = vmatpush.msrb.mxu3 %v379_v23  ;;  %v555_v20 = vld [vmem:[#allocation7 + $0x1f0] sm:$0xff]  ;;  %v554_v23 = vld [vmem:[#allocation7 + $0x1e8] sm:$0xff] }
  0x40   :  { %403 = vmatpush.msrb.mxu2 %v345_v34  ;;  %449 = vmatpush.msra.mxu0 %v346_v35  ;;  %v550_v30 = vld [vmem:[#allocation7 + $0x1c8] sm:$0xff]  ;;  %v520_v34 = vld [vmem:[#allocation7 + $0xd8] sm:$0xff]  ;;  %v547_v35 = vld [vmem:[#allocation7 + $0x1b0] sm:$0xff] }
  0x41   :  { %471 = vmatpush.msra.mxu1 %v380_v24  ;;  %426 = vmatpush.msrb.mxu3 %v377_v27  ;;  %v551_v24 = vld [vmem:[#allocation7 + $0x1d0] sm:$0xff]  ;;  %v524_v27 = vld [vmem:[#allocation7 + $0xf8] sm:$0xff]  ;;  %v522_v31 = vld [vmem:[#allocation7 + $0xe8] sm:$0xff] }
  0x42   :  { %404 = vmatpush.msrb.mxu2 %v343_v40  ;;  %450 = vmatpush.msra.mxu0 %v344_v41  ;;  %v545_v40 = vld [vmem:[#allocation7 + $0x1a0] sm:$0xff]  ;;  %v546_v41 = vld [vmem:[#allocation7 + $0x1a8] sm:$0xff] }
  0x43   :  { %472 = vmatpush.msra.mxu1 %v378_v28  ;;  %427 = vmatpush.msrb.mxu3 %v375_v32  ;;  %v521_v28 = vld [vmem:[#allocation7 + $0xe0] sm:$0xff] }
  0x44   :  { %405 = vmatpush.msrb.mxu2 %v341_v44  ;;  %451 = vmatpush.msra.mxu0 %v342_v45  ;;  %v985_v32 = vld [vmem:[%s1101_s4] sm:$0x3]  ;;  %v543_v44 = vld [vmem:[#allocation7 + $0x190] sm:$0xff] }
  0x45   :  { %473 = vmatpush.msra.mxu1 %v376_v33  ;;  %428 = vmatpush.msrb.mxu3 %v373_v36  ;;  %v519_v33 = vld [vmem:[#allocation7 + $0xd0] sm:$0xff]  ;;  %v548_v36 = vld [vmem:[#allocation7 + $0x1b8] sm:$0xff] }
  0x46   :  { %406 = vmatpush.msrb.mxu2 %v339_v62  ;;  %452 = vmatpush.msra.mxu0 %v340_v0  ;;  %v544_v45 = vld [vmem:[#allocation7 + $0x198] sm:$0xff] }
  0x47   :  { %474 = vmatpush.msra.mxu1 %v374_v37  ;;  %429 = vmatpush.msrb.mxu3 %v371_v42  ;;  %v517_v37 = vld [vmem:[#allocation7 + $0xc0] sm:$0xff]  ;;  %v515_v42 = vld [vmem:[#allocation7 + $0xb0] sm:$0xff] }
  0x48   :  { %407 = vmatpush.msrb.mxu2 %v337_v2  ;;  %453 = vmatpush.msra.mxu0 %v338_v4 }
  0x49   :  { %475 = vmatpush.msra.mxu1 %v372_v43  ;;  %430 = vmatpush.msrb.mxu3 %v369_v48  ;;  %v516_v43 = vld [vmem:[#allocation7 + $0xb8] sm:$0xff]  ;;  %v514_v48 = vld [vmem:[#allocation7 + $0xa8] sm:$0xff] }
  0x4a   :  { %408 = vmatpush.msrb.mxu2 %v335_v6  ;;  %454 = vmatpush.msra.mxu0 %v336_v8 }
  0x4b   :  { %476 = vmatpush.msra.mxu1 %v370_v49  ;;  %431 = vmatpush.msrb.mxu3 %v367_v54  ;;  %v227_v54 = vperm.slane %v985_v32, 0 }
  0x4c   :  { %409 = vmatpush.msrb.mxu2 %v333_v10  ;;  %455 = vmatpush.msra.mxu0 %v334_v12  ;;  %v537_v10 = vld [vmem:[#allocation7 + $0x160] sm:$0xff]  ;;  %v538_v12 = vld [vmem:[#allocation7 + $0x168] sm:$0xff] }
  0x4d   :  { %477 = vmatpush.msra.mxu1 %v368_v55  ;;  %432 = vmatpush.msrb.mxu3 %v365_v63  ;;  %v539_v55 = vld [vmem:[#allocation7 + $0x170] sm:$0xff] }
  0x4e   :  { %410 = vmatpush.msrb.mxu2 %v331_v14  ;;  %456 = vmatpush.msra.mxu0 %v332_v15  ;;  %v535_v14 = vld [vmem:[#allocation7 + $0x150] sm:$0xff]  ;;  %v510_v15 = vld [vmem:[#allocation7 + $0x88] sm:$0xff] }
  0x4f   :  { %478 = vmatpush.msra.mxu1 %v366_v1  ;;  %433 = vmatpush.msrb.mxu3 %v363_v3 }
  0x50   :  { %411 = vmatpush.msrb.mxu2 %v329_v16  ;;  %457 = vmatpush.msra.mxu0 %v330_v17  ;;  %v536_v16 = vld [vmem:[#allocation7 + $0x158] sm:$0xff]  ;;  %v507_v17 = vld [vmem:[#allocation7 + $0x70] sm:$0xff] }
  0x51   :  { %479 = vmatpush.msra.mxu1 %v364_v5  ;;  %434 = vmatpush.msrb.mxu3 %v361_v7 }
  0x52   :  { %412 = vmatpush.msrb.mxu2 %v327_v18  ;;  %458 = vmatpush.msra.mxu0 %v328_v19  ;;  %v533_v18 = vld [vmem:[#allocation7 + $0x140] sm:$0xff]  ;;  %v508_v19 = vld [vmem:[#allocation7 + $0x78] sm:$0xff] }
  0x53   :  { %480 = vmatpush.msra.mxu1 %v362_v9  ;;  %435 = vmatpush.msrb.mxu3 %v359_v11  ;;  %v511_v9 = vld [vmem:[#allocation7 + $0x90] sm:$0xff]  ;;  %v512_v11 = vld [vmem:[#allocation7 + $0x98] sm:$0xff] }
  0x55   :  { %481 = vmatpush.msra.mxu1 %v360_v13  ;;  %v509_v13 = vld [vmem:[#allocation7 + $0x80] sm:$0xff] }
  0x8f   :  { %v128_v46 = vpop.f32.mrf.mxu0 }
  0x90   :  { %v151_v47 = vpop.f32.mrf.mxu1  ;;  %v129_v50 = vadd.f32 %v128_v46, %v93_v38 }
  0x91   :  { %v152_v51 = vadd.f32 %v151_v47, %v94_v39  ;;  %v513_v47 = vld [vmem:[#allocation7 + $0xa0] sm:$0xff] }
  0x92   :  { %v157_v52 = vmax.f32 %v129_v50, 0.0 }
  0x93   :  { %v158_v53 = vmax.f32 %v152_v51, 0.0  ;;  %v541_v51 = vld [vmem:[#allocation7 + $0x180] sm:$0xff] }
  0x94   :  { %247 = vmatmul.f32.vlgmr.msra.gmra.mxu2 %v157_v52  ;;  %293 = vmatmul.f32.vlgmr.msrb.gmra.mxu0 %v157_v52  ;;  %v542_v52 = vld [vmem:[#allocation7 + $0x188] sm:$0xff] }
  0x95   :  { %270 = vmatmul.f32.vlgmr.msra.gmra.mxu3 %v158_v53  ;;  %316 = vmatmul.f32.vlgmr.msrb.gmra.mxu1 %v158_v53 }
  0x96   :  { %586 = vmatpush.msra.mxu3 %v555_v20  ;;  %632 = vmatpush.msrb.mxu1 %v556_v21  ;;  %v534_v20 = vld [vmem:[#allocation7 + $0x148] sm:$0xff]  ;;  %v505_v21 = vld [vmem:[#allocation7 + $0x60] sm:$0xff] }
  0x97   :  { %563 = vmatpush.msra.mxu2 %v523_v26  ;;  %609 = vmatpush.msrb.mxu0 %v524_v27  ;;  %v529_v26 = vld [vmem:[#allocation7 + $0x120] sm:$0xff]  ;;  %v504_v27 = vld [vmem:[#allocation7 + $0x58] sm:$0xff] }
  0x98   :  { %v131_v56 = vpop.f32.mrf.mxu0  ;;  %v154_v57 = vpop.f32.mrf.mxu1  ;;  %587 = vmatpush.msra.mxu3 %v553_v22  ;;  %633 = vmatpush.msrb.mxu1 %v554_v23  ;;  %v531_v22 = vld [vmem:[#allocation7 + $0x130] sm:$0xff]  ;;  %v506_v23 = vld [vmem:[#allocation7 + $0x68] sm:$0xff] }
  0x99   :  { %v132_v58 = vadd.f32 %v131_v56, %v93_v38  ;;  %v155_v59 = vadd.f32 %v154_v57, %v94_v39  ;;  %564 = vmatpush.msra.mxu2 %v521_v28  ;;  %610 = vmatpush.msrb.mxu0 %v522_v31  ;;  %v518_v38 = vld [vmem:[#allocation7 + $0xc8] sm:$0xff]  ;;  %v228_v39 = vperm.slane %v985_v32, 1  ;;  %v540_v56 = vld [vmem:[#allocation7 + $0x178] sm:$0xff] }
  0x9a   :  { %588 = vmatpush.msra.mxu3 %v551_v24  ;;  %634 = vmatpush.msrb.mxu1 %v552_v25  ;;  %v532_v24 = vld [vmem:[#allocation7 + $0x138] sm:$0xff]  ;;  %v503_v25 = vld [vmem:[#allocation7 + $0x50] sm:$0xff]  ;;  %v530_v28 = vld [vmem:[#allocation7 + $0x128] sm:$0xff] }
  0x9b   :  { %v159_v60 = vmax.f32 %v132_v58, 0.0  ;;  %v160_v61 = vmax.f32 %v155_v59, 0.0  ;;  %565 = vmatpush.msra.mxu2 %v519_v33  ;;  %611 = vmatpush.msrb.mxu0 %v520_v34  ;;  %v502_v31 = vld [vmem:[#allocation7 + $0x48] sm:$0xff]  ;;  %v528_v32 = vld [vmem:[#allocation7 + $0x118] sm:$0xff]  ;;  %v499_v33 = vld [vmem:[#allocation7 + $0x30] sm:$0xff] }
  0x9c   :  { %589 = vmatpush.msra.mxu3 %v549_v29  ;;  %635 = vmatpush.msrb.mxu1 %v550_v30  ;;  %v501_v29 = vld [vmem:[#allocation7 + $0x40] sm:$0xff]  ;;  %v527_v30 = vld [vmem:[#allocation7 + $0x110] sm:$0xff] }
  0x9d   :  { %250 = vmatmul.f32.gmra.mxu2 %v159_v60  ;;  %296 = vmatmul.f32.gmra.mxu0 %v159_v60  ;;  %v525_v34 = vld [vmem:[#allocation7 + $0x100] sm:$0xff] }
  0x9e   :  { %273 = vmatmul.f32.gmra.mxu3 %v160_v61  ;;  %319 = vmatmul.f32.gmra.mxu1 %v160_v61 }
  0x9f   :  { %590 = vmatpush.msra.mxu3 %v547_v35  ;;  %636 = vmatpush.msrb.mxu1 %v548_v36  ;;  %v500_v35 = vld [vmem:[#allocation7 + $0x38] sm:$0xff]  ;;  %v526_v36 = vld [vmem:[#allocation7 + $0x108] sm:$0xff] }
  0xa0   :  { %566 = vmatpush.msra.mxu2 %v517_v37  ;;  %612 = vmatpush.msrb.mxu0 %v518_v38  ;;  %v497_v37 = vld [vmem:[#allocation7 + $0x20] sm:$0xff]  ;;  %v498_v38 = vld [vmem:[#allocation7 + $0x28] sm:$0xff] }
  0xa1   :  { %591 = vmatpush.msra.mxu3 %v545_v40  ;;  %637 = vmatpush.msrb.mxu1 %v546_v41  ;;  %v496_v40 = vld [vmem:[#allocation7 + $0x18] sm:$0xff]  ;;  %v493_v41 = vld [vmem:[#allocation7] sm:$0xff] }
  0xa2   :  { %567 = vmatpush.msra.mxu2 %v515_v42  ;;  %613 = vmatpush.msrb.mxu0 %v516_v43  ;;  %v494_v42 = vld [vmem:[#allocation7 + $0x8] sm:$0xff]  ;;  %v690_v43 = vld [vmem:[%s1106_s9 + $0xf8] sm:$0xff] }
  0xa3   :  { %592 = vmatpush.msra.mxu3 %v543_v44  ;;  %638 = vmatpush.msrb.mxu1 %v544_v45  ;;  %v689_v44 = vld [vmem:[%s1106_s9 + $0xf0] sm:$0xff]  ;;  %v674_v45 = vld [vmem:[%s1106_s9 + $0x78] sm:$0xff] }
  0xa4   :  { %568 = vmatpush.msra.mxu2 %v513_v47  ;;  %614 = vmatpush.msrb.mxu0 %v514_v48  ;;  %v688_v47 = vld [vmem:[%s1106_s9 + $0xe8] sm:$0xff] }
  0xa5   :  { %593 = vmatpush.msra.mxu3 %v541_v51  ;;  %639 = vmatpush.msrb.mxu1 %v542_v52  ;;  %v672_v48 = vld [vmem:[%s1106_s9 + $0x68] sm:$0xff]  ;;  %v671_v51 = vld [vmem:[%s1106_s9 + $0x60] sm:$0xff]  ;;  %v686_v52 = vld [vmem:[%s1106_s9 + $0xd8] sm:$0xff] }
  0xa6   :  { %569 = vmatpush.msra.mxu2 %v511_v9  ;;  %615 = vmatpush.msrb.mxu0 %v512_v11 }
  0xa7   :  { %594 = vmatpush.msra.mxu3 %v539_v55  ;;  %640 = vmatpush.msrb.mxu1 %v540_v56  ;;  %v685_v55 = vld [vmem:[%s1106_s9 + $0xd0] sm:$0xff] }
  0xa8   :  { %570 = vmatpush.msra.mxu2 %v509_v13  ;;  %616 = vmatpush.msrb.mxu0 %v510_v15  ;;  %v669_v56 = vld [vmem:[%s1106_s9 + $0x50] sm:$0xff] }
  0xa9   :  { %595 = vmatpush.msra.mxu3 %v537_v10  ;;  %641 = vmatpush.msrb.mxu1 %v538_v12 }
  0xaa   :  { %571 = vmatpush.msra.mxu2 %v507_v17  ;;  %617 = vmatpush.msrb.mxu0 %v508_v19  ;;  %v668_v17 = vld [vmem:[%s1106_s9 + $0x48] sm:$0xff]  ;;  %v667_v19 = vld [vmem:[%s1106_s9 + $0x40] sm:$0xff] }
  0xab   :  { %596 = vmatpush.msra.mxu3 %v535_v14  ;;  %642 = vmatpush.msrb.mxu1 %v536_v16 }
  0xac   :  { %572 = vmatpush.msra.mxu2 %v505_v21  ;;  %618 = vmatpush.msrb.mxu0 %v506_v23  ;;  %v666_v21 = vld [vmem:[%s1106_s9 + $0x38] sm:$0xff]  ;;  %v665_v23 = vld [vmem:[%s1106_s9 + $0x30] sm:$0xff] }
  0xad   :  { %597 = vmatpush.msra.mxu3 %v533_v18  ;;  %643 = vmatpush.msrb.mxu1 %v534_v20  ;;  %v681_v18 = vld [vmem:[%s1106_s9 + $0xb0] sm:$0xff]  ;;  %v680_v20 = vld [vmem:[%s1106_s9 + $0xa8] sm:$0xff] }
  0xae   :  { %573 = vmatpush.msra.mxu2 %v503_v25  ;;  %619 = vmatpush.msrb.mxu0 %v504_v27  ;;  %v664_v25 = vld [vmem:[%s1106_s9 + $0x28] sm:$0xff]  ;;  %v663_v27 = vld [vmem:[%s1106_s9 + $0x20] sm:$0xff] }
  0xaf   :  { %598 = vmatpush.msra.mxu3 %v531_v22  ;;  %644 = vmatpush.msrb.mxu1 %v532_v24  ;;  %v679_v22 = vld [vmem:[%s1106_s9 + $0xa0] sm:$0xff]  ;;  %v678_v24 = vld [vmem:[%s1106_s9 + $0x98] sm:$0xff] }
  0xb0   :  { %574 = vmatpush.msra.mxu2 %v501_v29  ;;  %620 = vmatpush.msrb.mxu0 %v502_v31  ;;  %v662_v29 = vld [vmem:[%s1106_s9 + $0x18] sm:$0xff]  ;;  %v661_v31 = vld [vmem:[%s1106_s9 + $0x10] sm:$0xff] }
  0xb1   :  { %599 = vmatpush.msra.mxu3 %v529_v26  ;;  %645 = vmatpush.msrb.mxu1 %v530_v28  ;;  %v677_v26 = vld [vmem:[%s1106_s9 + $0x90] sm:$0xff]  ;;  %v676_v28 = vld [vmem:[%s1106_s9 + $0x88] sm:$0xff] }
  0xb2   :  { %575 = vmatpush.msra.mxu2 %v499_v33  ;;  %621 = vmatpush.msrb.mxu0 %v500_v35  ;;  %v659_v33 = vld [vmem:[%s1106_s9] sm:$0xff] }
  0xb3   :  { %600 = vmatpush.msra.mxu3 %v527_v30  ;;  %646 = vmatpush.msrb.mxu1 %v528_v32  ;;  %v675_v30 = vld [vmem:[%s1106_s9 + $0x80] sm:$0xff]  ;;  %v660_v32 = vld [vmem:[%s1106_s9 + $0x8] sm:$0xff] }
  0xb4   :  { %576 = vmatpush.msra.mxu2 %v497_v37  ;;  %622 = vmatpush.msrb.mxu0 %v498_v38 }
  0xb5   :  { %601 = vmatpush.msra.mxu3 %v525_v34  ;;  %647 = vmatpush.msrb.mxu1 %v526_v36  ;;  %v557_v34 = vld [vmem:[%s1105_s8] sm:$0x3] }
  0xb6   :  { %623 = vmatpush.msrb.mxu0 %v496_v40  ;;  %v560_v35 = vperm.slane %v557_v34, 1  ;;  %v559_v40 = vperm.slane %v557_v34, 0 }
  0xb8   :  { %624 = vmatpush.msrb.mxu0 %v494_v42 }
 0x111   :  { %v294_v46 = vpop.f32.mrf.mxu0 }
 0x112   :  { %v295_v49 = vadd.f32 %v294_v46, %v228_v39  ;;  %v317_v50 = vpop.f32.mrf.mxu1  ;;  %v673_v46 = vld [vmem:[%s1106_s9 + $0x70] sm:$0xff] }
 0x114   :  { %v318_v53 = vadd.f32 %v317_v50, %v295_v49  ;;  %v687_v49 = vld [vmem:[%s1106_s9 + $0xe0] sm:$0xff] }
 0x115   :  { %v391_v50 = vld [vmem:[%s1103_s6] sm:$0x3] }
 0x116   :  { %v324_v57 = vmax.f32 %v318_v53, 0.0  ;;  %v670_v53 = vld [vmem:[%s1106_s9 + $0x58] sm:$0xff] }
 0x117   :  { %v248_v58 = vpop.f32.mrf.mxu2 }
 0x118   :  { %v249_v59 = vadd.f32 %v248_v58, %v227_v54  ;;  %436 = vmatmul.f32.vlgmr.msrb.gmra.mxu3 %v324_v57  ;;  %482 = vmatmul.f32.vlgmr.msra.gmra.mxu1 %v324_v57  ;;  %v271_v60 = vpop.f32.mrf.mxu3  ;;  %v684_v57 = vld [vmem:[%s1106_s9 + $0xc8] sm:$0xff] }
 0x119   :  { %718 = vmatpush.msra.mxu1 %v690_v43  ;;  %784 = vmatpush.msrb.mxu3 %v690_v43 }
 0x11a   :  { %v297_v61 = vpop.f32.mrf.mxu0  ;;  %v272_v62 = vadd.f32 %v271_v60, %v249_v59 }
 0x11b   :  { %v298_v63 = vadd.f32 %v297_v61, %v228_v39  ;;  %v320_v0 = vpop.f32.mrf.mxu1  ;;  %v495_v39 = vld [vmem:[#allocation7 + $0x10] sm:$0xff]  ;;  %719 = vmatpush.msra.mxu1 %v689_v44  ;;  %785 = vmatpush.msrb.mxu3 %v689_v44  ;;  %v683_v61 = vld [vmem:[%s1106_s9 + $0xc0] sm:$0xff] }
 0x11c   :  { %v323_v1 = vmax.f32 %v272_v62, 0.0  ;;  %577 = vmatpush.msra.mxu2 %v495_v39 }
 0x11d   :  { %v321_v2 = vadd.f32 %v320_v0, %v298_v63  ;;  %720 = vmatpush.msra.mxu1 %v688_v47  ;;  %786 = vmatpush.msrb.mxu3 %v688_v47  ;;  %v393_v63 = vperm.slane %v391_v50, 0  ;;  %v682_v0 = vld [vmem:[%s1106_s9 + $0xb8] sm:$0xff] }
 0x11e   :  { %413 = vmatmul.f32.vlgmr.msrb.gmra.mxu2 %v323_v1  ;;  %459 = vmatmul.f32.vlgmr.msra.gmra.mxu0 %v323_v1 }
 0x11f   :  { %v326_v3 = vmax.f32 %v321_v2, 0.0  ;;  %578 = vmatpush.msra.mxu2 %v493_v41  ;;  %695 = vmatpush.msra.mxu0 %v674_v45 }
 0x120   :  { %v251_v4 = vpop.f32.mrf.mxu2  ;;  %721 = vmatpush.msra.mxu1 %v687_v49  ;;  %787 = vmatpush.msrb.mxu3 %v687_v49 }
 0x121   :  { %v252_v5 = vadd.f32 %v251_v4, %v227_v54  ;;  %439 = vmatmul.f32.gmra.mxu3 %v326_v3  ;;  %485 = vmatmul.f32.gmra.mxu1 %v326_v3  ;;  %v274_v6 = vpop.f32.mrf.mxu3  ;;  %v394_v54 = vperm.slane %v391_v50, 1 }
 0x122   :  { %768 = vmatpush.msrb.mxu2 %v674_v45  ;;  %696 = vmatpush.msra.mxu0 %v673_v46 }
 0x123   :  { %v275_v7 = vadd.f32 %v274_v6, %v252_v5  ;;  %722 = vmatpush.msra.mxu1 %v686_v52  ;;  %788 = vmatpush.msrb.mxu3 %v686_v52 }
 0x124   :  { %769 = vmatpush.msrb.mxu2 %v673_v46  ;;  %697 = vmatpush.msra.mxu0 %v672_v48 }
 0x125   :  { %v325_v8 = vmax.f32 %v275_v7, 0.0  ;;  %723 = vmatpush.msra.mxu1 %v685_v55  ;;  %789 = vmatpush.msrb.mxu3 %v685_v55 }
 0x126   :  { %770 = vmatpush.msrb.mxu2 %v672_v48  ;;  %698 = vmatpush.msra.mxu0 %v671_v51 }
 0x127   :  { %416 = vmatmul.f32.gmra.mxu2 %v325_v8  ;;  %462 = vmatmul.f32.gmra.mxu0 %v325_v8 }
 0x128   :  { %771 = vmatpush.msrb.mxu2 %v671_v51  ;;  %699 = vmatpush.msra.mxu0 %v670_v53 }
 0x129   :  { %724 = vmatpush.msra.mxu1 %v684_v57  ;;  %790 = vmatpush.msrb.mxu3 %v684_v57  ;;  %v805_v57 = vld [vmem:[#allocation2] ss:$0 sm:$0xff] }
 0x12a   :  { %772 = vmatpush.msrb.mxu2 %v670_v53  ;;  %700 = vmatpush.msra.mxu0 %v669_v56 }
 0x12b   :  { %725 = vmatpush.msra.mxu1 %v683_v61  ;;  %791 = vmatpush.msrb.mxu3 %v683_v61 }
 0x12c   :  { %773 = vmatpush.msrb.mxu2 %v669_v56  ;;  %701 = vmatpush.msra.mxu0 %v668_v17 }
 0x12d   :  { %726 = vmatpush.msra.mxu1 %v682_v0  ;;  %792 = vmatpush.msrb.mxu3 %v682_v0 }
 0x12e   :  { %774 = vmatpush.msrb.mxu2 %v668_v17  ;;  %702 = vmatpush.msra.mxu0 %v667_v19 }
 0x12f   :  { %727 = vmatpush.msra.mxu1 %v681_v18  ;;  %793 = vmatpush.msrb.mxu3 %v681_v18 }
 0x130   :  { %775 = vmatpush.msrb.mxu2 %v667_v19  ;;  %703 = vmatpush.msra.mxu0 %v666_v21 }
 0x131   :  { %728 = vmatpush.msra.mxu1 %v680_v20  ;;  %794 = vmatpush.msrb.mxu3 %v680_v20 }
 0x132   :  { %776 = vmatpush.msrb.mxu2 %v666_v21  ;;  %704 = vmatpush.msra.mxu0 %v665_v23 }
 0x133   :  { %729 = vmatpush.msra.mxu1 %v679_v22  ;;  %795 = vmatpush.msrb.mxu3 %v679_v22 }
 0x134   :  { %777 = vmatpush.msrb.mxu2 %v665_v23  ;;  %705 = vmatpush.msra.mxu0 %v664_v25 }
 0x135   :  { %730 = vmatpush.msra.mxu1 %v678_v24  ;;  %796 = vmatpush.msrb.mxu3 %v678_v24 }
 0x136   :  { %778 = vmatpush.msrb.mxu2 %v664_v25  ;;  %706 = vmatpush.msra.mxu0 %v663_v27 }
 0x137   :  { %731 = vmatpush.msra.mxu1 %v677_v26  ;;  %797 = vmatpush.msrb.mxu3 %v677_v26 }
 0x138   :  { %779 = vmatpush.msrb.mxu2 %v663_v27  ;;  %707 = vmatpush.msra.mxu0 %v662_v29 }
 0x139   :  { %732 = vmatpush.msra.mxu1 %v676_v28  ;;  %798 = vmatpush.msrb.mxu3 %v676_v28 }
 0x13a   :  { %780 = vmatpush.msrb.mxu2 %v662_v29  ;;  %708 = vmatpush.msra.mxu0 %v661_v31 }
 0x13b   :  { %733 = vmatpush.msra.mxu1 %v675_v30  ;;  %799 = vmatpush.msrb.mxu3 %v675_v30 }
 0x13c   :  { %781 = vmatpush.msrb.mxu2 %v661_v31  ;;  %709 = vmatpush.msra.mxu0 %v660_v32 }
 0x13e   :  { %782 = vmatpush.msrb.mxu2 %v660_v32  ;;  %710 = vmatpush.msra.mxu0 %v659_v33 }
 0x140   :  { %783 = vmatpush.msrb.mxu2 %v659_v33 }
 0x195   :  { %v483_v58 = vpop.f32.mrf.mxu1 }
 0x19b   :  { %v460_v59 = vpop.f32.mrf.mxu0  ;;  %v437_v2 = vpop.f32.mrf.mxu3 }
 0x19c   :  { %v461_v60 = vadd.f32 %v460_v59, %v394_v54 }
 0x19e   :  { %v484_v62 = vadd.f32 %v483_v58, %v461_v60  ;;  %v486_v8 = vpop.f32.mrf.mxu1 }
 0x1a0   :  { %v490_v1 = vmax.f32 %v484_v62, 0.0 }
 0x1a1   :  { %v414_v3 = vpop.f32.mrf.mxu2 }
 0x1a2   :  { %v415_v4 = vadd.f32 %v414_v3, %v393_v63  ;;  %602 = vmatmul.f32.vlgmr.msra.gmra.mxu3 %v490_v1  ;;  %648 = vmatmul.f32.vlgmr.msrb.gmra.mxu1 %v490_v1 }
 0x1a4   :  { %v463_v5 = vpop.f32.mrf.mxu0  ;;  %v438_v6 = vadd.f32 %v437_v2, %v415_v4  ;;  %v440_v14 = vpop.f32.mrf.mxu3 }
 0x1a5   :  { %v464_v7 = vadd.f32 %v463_v5, %v394_v54 }
 0x1a6   :  { %v489_v9 = vmax.f32 %v438_v6, 0.0 }
 0x1a7   :  { %v487_v10 = vadd.f32 %v486_v8, %v464_v7 }
 0x1a8   :  { %579 = vmatmul.f32.vlgmr.msra.gmra.mxu2 %v489_v9  ;;  %625 = vmatmul.f32.vlgmr.msrb.gmra.mxu0 %v489_v9 }
 0x1a9   :  { %v492_v11 = vmax.f32 %v487_v10, 0.0 }
 0x1aa   :  { %v417_v12 = vpop.f32.mrf.mxu2 }
 0x1ab   :  { %v418_v13 = vadd.f32 %v417_v12, %v393_v63  ;;  %605 = vmatmul.f32.gmra.mxu3 %v492_v11  ;;  %651 = vmatmul.f32.gmra.mxu1 %v492_v11 }
 0x1ad   :  { %v441_v15 = vadd.f32 %v440_v14, %v418_v13 }
 0x1af   :  { %v491_v16 = vmax.f32 %v441_v15, 0.0 }
 0x1b1   :  { %582 = vmatmul.f32.gmra.mxu2 %v491_v16  ;;  %628 = vmatmul.f32.gmra.mxu0 %v491_v16 }
 0x21f   :  { %v649_v36 = vpop.f32.mrf.mxu1 }
 0x225   :  { %v626_v37 = vpop.f32.mrf.mxu0  ;;  %v603_v42 = vpop.f32.mrf.mxu3 }
 0x226   :  { %v627_v38 = vadd.f32 %v626_v37, %v560_v35 }
 0x228   :  { %v650_v39 = vadd.f32 %v649_v36, %v627_v38  ;;  %v652_v48 = vpop.f32.mrf.mxu1 }
 0x22a   :  { %v656_v41 = vmax.f32 %v650_v39, 0.0 }
 0x22b   :  { %v580_v43 = vpop.f32.mrf.mxu2 }
 0x22c   :  { %v581_v44 = vadd.f32 %v580_v43, %v559_v40  ;;  %734 = vmatmul.f32.vlgmr.msra.gmra.mxu1 %v656_v41 }
 0x22e   :  { %v629_v45 = vpop.f32.mrf.mxu0  ;;  %v604_v46 = vadd.f32 %v603_v42, %v581_v44  ;;  %v606_v54 = vpop.f32.mrf.mxu3 }
 0x22f   :  { %v630_v47 = vadd.f32 %v629_v45, %v560_v35 }
 0x230   :  { %v655_v49 = vmax.f32 %v604_v46, 0.0 }
 0x231   :  { %v653_v50 = vadd.f32 %v652_v48, %v630_v47 }
 0x232   :  { %711 = vmatmul.f32.vlgmr.msra.gmra.mxu0 %v655_v49 }
 0x233   :  { %v658_v51 = vmax.f32 %v653_v50, 0.0 }
 0x234   :  { %v583_v52 = vpop.f32.mrf.mxu2 }
 0x235   :  { %v584_v53 = vadd.f32 %v583_v52, %v559_v40  ;;  %737 = vmatmul.f32.vlgmr.msrb.gmra.mxu3 %v658_v51 }
 0x237   :  { %v607_v55 = vadd.f32 %v606_v54, %v584_v53 }
 0x239   :  { %v657_v56 = vmax.f32 %v607_v55, 0.0 }
 0x23b   :  { %714 = vmatmul.f32.vlgmr.msrb.gmra.mxu2 %v657_v56 }
 0x2a9   :  { %v735_v60 = vpop.f32.mrf.mxu1 }
 0x2af   :  { %v712_v58 = vpop.f32.mrf.mxu0 }
 0x2b0   :  { %v713_v59 = vadd.f32 %v805_v57, %v712_v58 }
 0x2b2   :  { %v736_v61 = vadd.f32 %v735_v60, %v713_v59 }
 0x2b4   :  { %v741_v62 = vmul.f32 0.5, %v736_v61 }
 0x2b6   :  { %806 = vtanh.f32 %v741_v62 }
 0x2b8   :  { %v738_v4 = vpop.f32.mrf.mxu3 }
 0x2bc   :  { %v807_v63 = vpop.eup %806 }
 0x2bd   :  { %v745_v0 = vadd.f32 1.0, %v807_v63 }
 0x2be   :  { %v715_v1 = vpop.f32.mrf.mxu2 }
 0x2bf   :  { %v716_v2 = vadd.f32 %v805_v57, %v715_v1  ;;  %v747_v3 = vmul.f32 0.5, %v745_v0 }
 0x2c1   :  { %v739_v5 = vadd.f32 %v738_v4, %v716_v2  ;;  %v749_v6 = vmul.f32 9.0, %v747_v3 }
 0x2c3   :  { %v742_v7 = vmul.f32 0.5, %v739_v5  ;;  %v751_v8 = vadd.f32 1.0, %v749_v6 }
 0x2c5   :  { %808 = vtanh.f32 %v742_v7  ;;  %754 = vst.msk [vmem:[%s1108_s11] sm:$0xff] %vm753_vm2, %v751_v8 }
 0x2cb   :  { %v809_v9 = vpop.eup %808 }
 0x2cc   :  { %v746_v10 = vadd.f32 1.0, %v809_v9 }
 0x2ce   :  { %v748_v11 = vmul.f32 0.5, %v746_v10 }
 0x2d0   :  { %v750_v12 = vmul.f32 9.0, %v748_v11 }
 0x2d2   :  { %v752_v13 = vadd.f32 1.0, %v750_v12 }
 0x2d4   :  { %755 = vst.msk [vmem:[%s1108_s11 + $0x8] sm:$0xff] %vm753_vm2, %v752_v13 }
 0x2d5   :  { %760 = vsyncpa [#allocation4], 1 }
 0x2d6   :  { %761 = vsyncpa [#allocation6], 1 }

</bundles_post_ra>
